<compile_context>
chip_gen: v6e
topology: v6e:2x2x1
jax: 0.10.0
libtpu: 0.0.40
codegen_flags: <defaults>
</compile_context>

<pallas_src>
import jax
import jax.numpy as jnp
from jax.experimental import pallas as pl
from jax.experimental.pallas import tpu as pltpu

LANES = 128
SUBLANES = 8


def _round_up(a: int, m: int) -> int:
    return ((a + m - 1) // m) * m


def _make_vivit_kernel(inv_n: float):
    def kernel(x_ref, pe_ref, w_enc_ref, b_enc_ref, w_fc_ref, b_fc_ref,
               out_ref, acc_ref):
        k = pl.program_id(1)

        @pl.when(k == 0)
        def _init():
            acc_ref[...] = jnp.zeros_like(acc_ref)

        tN = x_ref.shape[0]
        # x + pe for this token tile.  pe is VMEM-resident (constant block
        # index -> DMA'd once for the whole grid) and sliced here, so it is
        # never re-read from HBM.  Add stays f32 (works on v5e/v6e/v7x VALUs).
        off = pl.multiple_of(k * tN, tN)
        tok = x_ref[...] + pe_ref[pl.ds(off, tN), :]               # (tN, D) f32

        # Streaming loop: pure token sum (XLU reduce; XLU slot is idle here).
        # Encoder Linear + classifier are applied once to the pooled mean in
        # the finalize step: mean(tok @ W + b) == mean(tok) @ W + b.
        # TODO(synk): this linearity shortcut is only valid while the ViViT
        # encoder is a per-token Linear; a real transformer encoder must go
        # back to a per-tile (tN, D) x (D, E) MXU matmul here.
        acc_ref[...] += jnp.sum(tok, axis=0, keepdims=True)        # (1, D)

        @pl.when(k == pl.num_programs(1) - 1)
        def _finalize():
            pooled = acc_ref[...] * jnp.float32(inv_n)             # (1, D)
            h = jnp.dot(pooled, w_enc_ref[...],
                        preferred_element_type=jnp.float32) + b_enc_ref[...]
            logits = jnp.dot(h, w_fc_ref[...],
                             preferred_element_type=jnp.float32) + b_fc_ref[...]
            m = jnp.max(logits, axis=-1, keepdims=True)
            lse = m + jnp.log(jnp.sum(jnp.exp(logits - m), axis=-1,
                                      keepdims=True))
            out_ref[...] = (logits - lse).reshape(out_ref.shape)   # lane-dense

    return kernel


def vivit_forward(x, pe, w_enc, b_enc, w_fc, b_fc, *, token_tile=None):
    B, T, S, D = x.shape
    N = T * S
    E = w_enc.shape[1]
    C = w_fc.shape[1]
    c_pad = _round_up(max(C, LANES), LANES)

    # Token rows padded (with zeros) up to a sublane multiple so the (tN, D)
    # BlockSpec is always legal, independent of T*S.
    n_pad = _round_up(N, SUBLANES)
    if token_tile is None:
        # Largest tile dividing the padded token count.  At real ViViT dims:
        # v5e/v6e can go 1024-2048 (raise vmem_limit_bytes to ~96 MiB); v7x
        # must keep the x double-buffer + resident pe + weights under ~48 MiB
        # of its 64 MiB VMEM.
        token_tile = max(c for c in (1024, 512, 256, 128, 64, 32, 16, 8)
                         if c <= n_pad and n_pad % c == 0)
    tN = token_tile
    assert n_pad % tN == 0 and tN % SUBLANES == 0
    k_tiles = n_pad // tN

    # No wrapper-side dtype casts: x / pe stream as f32 (one HBM pass each).
    x_f = x.astype(jnp.float32).reshape(B, N, D)
    pe_f = pe.astype(jnp.float32).reshape(N, D)
    if n_pad != N:
        x_f = jnp.pad(x_f, ((0, 0), (0, n_pad - N), (0, 0)))
        pe_f = jnp.pad(pe_f, ((0, n_pad - N), (0, 0)))
    x_flat = x_f.reshape(B * n_pad, D)

    w_enc_f = w_enc.astype(jnp.float32)
    b_enc_f = b_enc.reshape(1, E).astype(jnp.float32)

    # Classifier padded to a lane-dense 128-wide output; padded lanes get a
    # -1e30 bias so the f32 log-softmax normalizer ignores them.
    w_fc_pad = jnp.zeros((E, c_pad), jnp.float32).at[:, :C].set(
        w_fc.astype(jnp.float32))
    b_fc_pad = jnp.full((1, c_pad), jnp.float32(-1e30)).at[:, :C].set(
        b_fc.reshape(1, C).astype(jnp.float32))

    kernel = _make_vivit_kernel(1.0 / N)

    out_pad = pl.pallas_call(
        kernel,
        out_shape=jax.ShapeDtypeStruct((B, 1, c_pad), jnp.float32),
        grid_spec=pltpu.PrefetchScalarGridSpec(
            num_scalar_prefetch=0,
            grid=(B, k_tiles),
            in_specs=[
                # x: (tN, D) token tile walked along the flattened rows.
                pl.BlockSpec((tN, D), lambda b, k, K=k_tiles: (b * K + k, 0)),
                # pe: whole array, constant block index -> DMA'd once, sliced
                # per tile inside the kernel (never re-read per batch).
                pl.BlockSpec((n_pad, D), lambda b, k: (0, 0)),
                # Constant-index weight blocks.
                # TODO(synk): at real E/D on v7x, mark these
                # pipeline_mode=pl.Buffered(1) and cast to bf16 for VMEM headroom.
                pl.BlockSpec((D, E), lambda b, k: (0, 0)),
                pl.BlockSpec((1, E), lambda b, k: (0, 0)),
                pl.BlockSpec((E, c_pad), lambda b, k: (0, 0)),
                pl.BlockSpec((1, c_pad), lambda b, k: (0, 0)),
            ],
            out_specs=pl.BlockSpec((1, 1, c_pad), lambda b, k: (b, 0, 0)),
            scratch_shapes=[pltpu.VMEM((1, D), jnp.float32)],
        ),
        compiler_params=pltpu.CompilerParams(
            # Batch axis shards across TensorCores (v7x megacore); token-tile
            # axis is the reduction into the pooled accumulator.
            dimension_semantics=("parallel", "arbitrary"),
            vmem_limit_bytes=32 * 1024 * 1024,
        ),
    )(x_flat, pe_f, w_enc_f, b_enc_f, w_fc_pad, b_fc_pad)

    return out_pad[:, 0, :C]


def vivit_reference(x, pe, w_enc, b_enc, w_fc, b_fc):
    """Pure-JAX f32 reference mirroring the PyTorch forward."""
    B = x.shape[0]
    h = jnp.einsum("btsd,de->btse", x + pe, w_enc) + b_enc    # encoder (Linear)
    h = h.reshape(B, -1, h.shape[-1])                         # (B, N, E)
    pooled = jnp.mean(h, axis=1)                              # (B, E)
    logits = pooled @ w_fc + b_fc                             # (B, C)
    return jax.nn.log_softmax(logits, axis=1)


if __name__ == "__main__":
    B, T, S, D = 2, 8, 16, 32      # batch, n_temporal, n_spatial, d
    out_dim, num_classes = 32, 10

    key = jax.random.PRNGKey(0)
    k1, k2, k3, k4, k5, k6 = jax.random.split(key, 6)
    x = jax.random.normal(k1, (B, T, S, D), jnp.float32)
    pe = jax.random.normal(k2, (1, T, S, D), jnp.float32)      # torch.randn(1,T,S,d)
    w_enc = jax.random.normal(k3, (D, out_dim), jnp.float32) * (D ** -0.5)
    b_enc = jax.random.normal(k4, (1, out_dim), jnp.float32) * 0.01
    w_fc = jax.random.normal(k5, (out_dim, num_classes), jnp.float32) * (out_dim ** -0.5)
    b_fc = jax.random.normal(k6, (1, num_classes), jnp.float32) * 0.01

    out = vivit_forward(x, pe, w_enc, b_enc, w_fc, b_fc)
    out = jax.block_until_ready(out)

    ref = vivit_reference(x, pe, w_enc, b_enc, w_fc, b_fc)
    assert out.shape == (B, num_classes)
    max_err = float(jnp.max(jnp.abs(out - ref)))
    assert jnp.allclose(out, ref, atol=2e-3, rtol=2e-3), (
        f"mismatch vs reference: max abs err {max_err}")
    assert jnp.array_equal(jnp.argmax(out, axis=1), jnp.argmax(ref, axis=1))

    print("KERNEL_OK")
</pallas_src>

<mosaic_0001>
module attributes {stable_mosaic.version = 11 : i64} {
  func.func @kernel(%arg0: i32, %arg1: i32, %arg2: memref<128x32xf32, #tpu.memory_space<vmem>>, %arg3: memref<128x32xf32, #tpu.memory_space<vmem>>, %arg4: memref<32x32xf32, #tpu.memory_space<vmem>>, %arg5: memref<1x32xf32, #tpu.memory_space<vmem>>, %arg6: memref<32x128xf32, #tpu.memory_space<vmem>>, %arg7: memref<1x128xf32, #tpu.memory_space<vmem>>, %arg8: memref<1x1x128xf32, #tpu.memory_space<vmem>>, %arg9: memref<1x32xf32, #tpu.memory_space<vmem>>) attributes {dimension_semantics = [#tpu.dimension_semantics<parallel>, #tpu.dimension_semantics<arbitrary>], iteration_bounds = array<i64: 2, 1>, scalar_prefetch = 0 : i64, scratch_operands = 1 : i64, tpu.core_type = #tpu.core_type<tc>, window_params = [{transform_indices = @transform_0, window_bounds = array<i64: 128, 32>}, {pipeline_mode = #tpu.pipeline_mode<synchronous>, transform_indices = @transform_1, window_bounds = array<i64: 128, 32>}, {pipeline_mode = #tpu.pipeline_mode<synchronous>, transform_indices = @transform_2, window_bounds = array<i64: 32, 32>}, {pipeline_mode = #tpu.pipeline_mode<synchronous>, transform_indices = @transform_3, window_bounds = array<i64: 1, 32>}, {pipeline_mode = #tpu.pipeline_mode<synchronous>, transform_indices = @transform_4, window_bounds = array<i64: 32, 128>}, {pipeline_mode = #tpu.pipeline_mode<synchronous>, transform_indices = @transform_5, window_bounds = array<i64: 1, 128>}, {transform_indices = @transform_6, window_bounds = array<i64: 1, 1, 128>}]} {
    %c0_i32 = arith.constant 0 : i32
    %0 = arith.cmpi eq, %arg1, %c0_i32 : i32
    %1 = arith.extui %0 : i1 to i32
    %c0_i32_0 = arith.constant 0 : i32
    %2 = arith.cmpi ne, %1, %c0_i32_0 : i32
    scf.if %2 {
      %cst_9 = arith.constant 0.000000e+00 : f32
      %17 = vector.broadcast %cst_9 : f32 to vector<1x32xf32>
      %c0_10 = arith.constant 0 : index
      %c0_11 = arith.constant 0 : index
      %18 = vector.load %arg9[%c0_10, %c0_11] : memref<1x32xf32, #tpu.memory_space<vmem>>, vector<1x32xf32>
      tpu.vector_store %arg9[%c0_10, %c0_11], %17 {strides = array<i32>} : memref<1x32xf32, #tpu.memory_space<vmem>>, vector<1x32xf32>,
    } else {
    }
    %c128_i32 = arith.constant 128 : i32
    %3 = arith.muli %arg1, %c128_i32 : i32
    %4 = tpu.assume_multiple %3, 128 : i32
    %c0 = arith.constant 0 : index
    %c0_1 = arith.constant 0 : index
    %5 = vector.load %arg2[%c0, %c0_1] : memref<128x32xf32, #tpu.memory_space<vmem>>, vector<128x32xf32>
    %6 = arith.index_cast %4 : i32 to index
    %c0_2 = arith.constant 0 : index
    %7 = vector.load %arg3[%6, %c0_2] : memref<128x32xf32, #tpu.memory_space<vmem>>, vector<128x32xf32>
    %8 = arith.addf %5, %7 : vector<128x32xf32>
    %c0_3 = arith.constant 0 : index
    %c0_4 = arith.constant 0 : index
    %9 = vector.load %arg9[%c0_3, %c0_4] : memref<1x32xf32, #tpu.memory_space<vmem>>, vector<1x32xf32>
    %cst = arith.constant dense<0.000000e+00> : vector<32xf32>
    %10 = vector.multi_reduction <add>, %8, %cst [0] : vector<128x32xf32> to vector<32xf32>
    %11 = vector.shape_cast %10 : vector<32xf32> to vector<1x32xf32>
    %12 = arith.addf %9, %11 : vector<1x32xf32>
    %c0_5 = arith.constant 0 : index
    %c0_6 = arith.constant 0 : index
    %13 = vector.load %arg9[%c0_5, %c0_6] : memref<1x32xf32, #tpu.memory_space<vmem>>, vector<1x32xf32>
    tpu.vector_store %arg9[%c0_5, %c0_6], %12 {strides = array<i32>} : memref<1x32xf32, #tpu.memory_space<vmem>>, vector<1x32xf32>,
    %c0_i32_7 = arith.constant 0 : i32
    %14 = arith.cmpi eq, %arg1, %c0_i32_7 : i32
    %15 = arith.extui %14 : i1 to i32
    %c0_i32_8 = arith.constant 0 : i32
    %16 = arith.cmpi ne, %15, %c0_i32_8 : i32
    scf.if %16 {
      %c0_9 = arith.constant 0 : index
      %c0_10 = arith.constant 0 : index
      %17 = vector.load %arg9[%c0_9, %c0_10] : memref<1x32xf32, #tpu.memory_space<vmem>>, vector<1x32xf32>
      %cst_11 = arith.constant 7.812500e-03 : f32
      %18 = vector.broadcast %cst_11 : f32 to vector<1x32xf32>
      %19 = arith.mulf %17, %18 : vector<1x32xf32>
      %c0_12 = arith.constant 0 : index
      %c0_13 = arith.constant 0 : index
      %20 = vector.load %arg4[%c0_12, %c0_13] : memref<32x32xf32, #tpu.memory_space<vmem>>, vector<32x32xf32>
      %cst_14 = arith.constant dense<0.000000e+00> : vector<1x32xf32>
      %21 = tpu.matmul %19, %20, %cst_14 {dimension_numbers = #tpu.dot_dimension_numbers<[1], [0], [0], [1], [0, 0, 1, 1], [], []>} : vector<1x32xf32>, vector<32x32xf32>, vector<1x32xf32> -> vector<1x32xf32>
      %c0_15 = arith.constant 0 : index
      %c0_16 = arith.constant 0 : index
      %22 = vector.load %arg5[%c0_15, %c0_16] : memref<1x32xf32, #tpu.memory_space<vmem>>, vector<1x32xf32>
      %23 = arith.addf %21, %22 : vector<1x32xf32>
      %c0_17 = arith.constant 0 : index
      %c0_18 = arith.constant 0 : index
      %24 = vector.load %arg6[%c0_17, %c0_18] : memref<32x128xf32, #tpu.memory_space<vmem>>, vector<32x128xf32>
      %cst_19 = arith.constant dense<0.000000e+00> : vector<1x128xf32>
      %25 = tpu.matmul %23, %24, %cst_19 {dimension_numbers = #tpu.dot_dimension_numbers<[1], [0], [0], [1], [0, 0, 1, 1], [], []>} : vector<1x32xf32>, vector<32x128xf32>, vector<1x128xf32> -> vector<1x128xf32>
      %c0_20 = arith.constant 0 : index
      %c0_21 = arith.constant 0 : index
      %26 = vector.load %arg7[%c0_20, %c0_21] : memref<1x128xf32, #tpu.memory_space<vmem>>, vector<1x128xf32>
      %27 = arith.addf %25, %26 : vector<1x128xf32>
      %cst_22 = arith.constant dense<0xFF800000> : vector<1xf32>
      %28 = vector.multi_reduction <maximumf>, %27, %cst_22 [1] : vector<1x128xf32> to vector<1xf32>
      %29 = vector.shape_cast %28 : vector<1xf32> to vector<1x1xf32>
      %30 = vector.broadcast %29 : vector<1x1xf32> to vector<1x128xf32>
      %31 = arith.subf %27, %30 : vector<1x128xf32>
      %32 = math.exp %31 : vector<1x128xf32>
      %cst_23 = arith.constant dense<0.000000e+00> : vector<1xf32>
      %33 = vector.multi_reduction <add>, %32, %cst_23 [1] : vector<1x128xf32> to vector<1xf32>
      %34 = vector.shape_cast %33 : vector<1xf32> to vector<1x1xf32>
      %35 = math.log %34 : vector<1x1xf32>
      %36 = arith.addf %29, %35 : vector<1x1xf32>
      %37 = vector.broadcast %36 : vector<1x1xf32> to vector<1x128xf32>
      %38 = arith.subf %27, %37 : vector<1x128xf32>
      %39 = vector.shape_cast %38 : vector<1x128xf32> to vector<1x1x128xf32>
      %c0_24 = arith.constant 0 : index
      %c0_25 = arith.constant 0 : index
      %c0_26 = arith.constant 0 : index
      %40 = vector.load %arg8[%c0_24, %c0_25, %c0_26] : memref<1x1x128xf32, #tpu.memory_space<vmem>>, vector<1x1x128xf32>
      tpu.vector_store %arg8[%c0_24, %c0_25, %c0_26], %39 {strides = array<i32>} : memref<1x1x128xf32, #tpu.memory_space<vmem>>, vector<1x1x128xf32>,
    } else {
    }
    return
  }
  func.func @transform_0(%arg0: i32, %arg1: i32) -> (i32, i32) {
    %c1_i32 = arith.constant 1 : i32
    %0 = arith.muli %arg0, %c1_i32 : i32
    %1 = arith.addi %0, %arg1 : i32
    %c0_i32 = arith.constant 0 : i32
    %c0_i32_0 = arith.constant 0 : i32
    return %1, %c0_i32 : i32, i32
  }
  func.func @transform_1(%arg0: i32, %arg1: i32) -> (i32, i32) {
    %c0_i32 = arith.constant 0 : i32
    %c0_i32_0 = arith.constant 0 : i32
    %c0_i32_1 = arith.constant 0 : i32
    return %c0_i32, %c0_i32_0 : i32, i32
  }
  func.func @transform_2(%arg0: i32, %arg1: i32) -> (i32, i32) {
    %c0_i32 = arith.constant 0 : i32
    %c0_i32_0 = arith.constant 0 : i32
    %c0_i32_1 = arith.constant 0 : i32
    return %c0_i32, %c0_i32_0 : i32, i32
  }
  func.func @transform_3(%arg0: i32, %arg1: i32) -> (i32, i32) {
    %c0_i32 = arith.constant 0 : i32
    %c0_i32_0 = arith.constant 0 : i32
    %c0_i32_1 = arith.constant 0 : i32
    return %c0_i32, %c0_i32_0 : i32, i32
  }
  func.func @transform_4(%arg0: i32, %arg1: i32) -> (i32, i32) {
    %c0_i32 = arith.constant 0 : i32
    %c0_i32_0 = arith.constant 0 : i32
    %c0_i32_1 = arith.constant 0 : i32
    return %c0_i32, %c0_i32_0 : i32, i32
  }
  func.func @transform_5(%arg0: i32, %arg1: i32) -> (i32, i32) {
    %c0_i32 = arith.constant 0 : i32
    %c0_i32_0 = arith.constant 0 : i32
    %c0_i32_1 = arith.constant 0 : i32
    return %c0_i32, %c0_i32_0 : i32, i32
  }
  func.func @transform_6(%arg0: i32, %arg1: i32) -> (i32, i32, i32) {
    %c0_i32 = arith.constant 0 : i32
    %c0_i32_0 = arith.constant 0 : i32
    %c0_i32_1 = arith.constant 0 : i32
    return %arg0, %c0_i32, %c0_i32_0 : i32, i32, i32
  }
}

</mosaic_0001>

<bundles_post_ra>
// kernel: tpu_custom_call.1
= control target key start
LH: loop header
LB: loop body
LE: loop exit
PB: predicated region body
PF: predicated region fallthrough
CT: control target
= control target key end

     0   :  { %11 = vsyncpa [#allocation4], 0  ;;  %s1069_s0 = inlined_call_operand.vmem [shape: f32[256,32], index: 0, kind: input, shape index: {}]   ;;  %s1070_s1 = inlined_call_operand.vmem [shape: f32[128,32], index: 1, kind: input, shape index: {}]   ;;  %s1071_s2 = inlined_call_operand.vmem [shape: f32[32,32], index: 2, kind: input, shape index: {}]   ;;  %s1072_s3 = inlined_call_operand.vmem [shape: f32[1,32], index: 3, kind: input, shape index: {}]   ;;  %s1073_s4 = inlined_call_operand.vmem [shape: f32[32,128], index: 4, kind: input, shape index: {}]   ;;  %s1074_s5 = inlined_call_operand.vmem [shape: f32[1,128], index: 5, kind: input, shape index: {}]   ;;  %s1075_s6 = inlined_call_operand.hbm [shape: f32[2,1,128], index: 6, kind: output, shape index: {}]  }
   0x1   :  { %13 = vsyncpa [#allocation4 + $0x1], 0  ;;  %s843_s21 = smov 0   ;;  %s845_s22 = smov 0  }
   0x2   :  { %s847_s23 = smov 0   ;;  %s849_s24 = smov 0  }
   0x3   :  { %s851_s25 = smov 0   ;;  %s853_s26 = smov 0  }
   0x4 LB: > { %s622_s27 = sadd.s32 4294967295, %s803_s26   ;;  %s623_s28 = sadd.s32 4294967294, %s803_s26   ;;  %s803_s26 = sphi %s853_s26, %s19_s26   ;;  %s799_s25 = sphi %s851_s25, %s1082_s25   ;;  %s795_s24 = sphi %s849_s24, %s1081_s24   ;;  %s791_s23 = sphi %s847_s23, %s1080_s23   ;;  %s787_s22 = sphi %s845_s22, %s1079_s22   ;;  %s783_s21 = sphi %s843_s21, %s1078_s21  }
   0x5   : > { %s31_s29 = sadd.s32 1, %s799_s25  ;;  %s171_s30 = sadd.s32 1, %s791_s23 }
   0x6   : > { %p33_p0 = scmp.ge.s32.totalorder %s31_s29, 2  ;;  %p181_p1 = scmp.ne.s32.totalorder %s791_s23, %s787_s22 }
   0x7   : > { %p182_p2 = scmp.eq.s32.totalorder %s622_s27, 1  ;;  %p187_p3 = scmp.ne.s32.totalorder %s787_s22, %s783_s21 }
   0x8   : > { %s1084_s29 = smov (%p33_p0, %s31_s29), 0  ;;  %p188_p5 = scmp.eq.s32.totalorder %s623_s28, 1 }
   0x9   : > { %p881_p4 = por %p182_p2, %p181_p1  ;;  %s168_s8 = ssub.s32 %s799_s25, %s1084_s29 }
   0xa   : > { %p626_p6 = scmp.ge.s32.totalorder %s803_s26, 1  ;;  %p169_p7 = scmp.eq.s32.totalorder %s168_s8, 0 }
   0xb   : > { %p888_p8 = por %p188_p5, %p187_p3  ;;  %p232_p9 = scmp.lt.s32.totalorder %s803_s26, 3 }
   0xc   : > { %s894_s10 = scalar_select %p169_p7, %s791_s23, %s171_s30  }
   0xd   : > { %p233_p10 = pnand %p626_p6, %p232_p9 }
   0xe   : > { %s899_s13 = sshll.u32 (!%p233_p10), %s795_s24, 4  ;;  %s260_s15 = sand.u32 (!%p233_p10), 1, %s787_s22  }
   0xf   : > { %236 = sbr.rel (%p233_p10) target bundleno = 802 (0x322), region = 44  ;;  %p264_p11 = scmp.lt.s32.totalorder (!%p233_p10), %s899_s13, 31 }
  0x10   : > { %s261_s16 = scalar_lea.vmem (!%p233_p10), [#allocation3], %s260_s15  ;;  %s555_s20 = scalar_lea.hbm (!%p233_p10), %s1075_s6, %s899_s13 }
  0x11   : > { %s557_s17 = sshll.u32 (!%p233_p10), %s261_s16, 4  ;;  %s807_s27 = smov (!%p233_p10), [#allocation3]   ;;  %s558_s17 = int_to_ptr.vmem [resolvable:$true] %s557_s17 }
  0x12   : > { %s731_s28 = sshll.u32 (!%p233_p10), %s807_s27, 4  ;;  %s732_s28 = int_to_ptr.vmem [resolvable:$false] %s731_s28 }
  0x13   : > { %s733_s30 = scalar_lea.vmem (!%p233_p10), %s732_s28, 32  ;;  %p734_p1 = scmp.lt.s32.totalorder (!%p233_p10), %s558_s17, %s732_s28 }
  0x14   : > { %v376_v0 = vld [vmem:[%s1071_s2 + $0x18] sm:$0xff]  ;;  %v805_v1 = vmov 0.0   ;;  %v375_v2 = vld [vmem:[%s1071_s2 + $0x10] sm:$0xff]  ;;  %vm806_vm0 = vmmov 0   ;;  %vm274_vm1 = vcmask 253952   ;;  %v374_v3 = vld [vmem:[%s1071_s2 + $0x8] sm:$0xff] }
  0x15   : > { %644 = vmatprep.subr.mxu0 %v805_v1  ;;  %652 = vmatprep.mubr.msk.f32.mxu0 %vm806_vm0, %v805_v1  ;;  %275 = vst.msk [vmem:[#allocation2] sm:$0x1] %vm274_vm1, %v805_v1  ;;  %s265_s18 = scalar_select %p264_p11, %s899_s13, 31  ;;  %v373_v4 = vld [vmem:[%s1071_s2] sm:$0xff]  ;;  %v295_v6 = vld [vmem:[%s1070_s1 + $0x8] sm:$0xff]  ;;  %v296_v7 = vld [vmem:[%s1070_s1 + $0x10] sm:$0xff] }
  0x16   : > { %645 = vmatpush3.msra.mxu0 %v376_v0  ;;  %655 = vmatprep.subr.mxu1 %v805_v1  ;;  %v294_v5 = vld [vmem:[%s1070_s1] sm:$0xff]  ;;  %v297_v8 = vld [vmem:[%s1070_s1 + $0x18] sm:$0xff]  ;;  %vm327_vm2 = vcmask 261120   ;;  %v299_v21 = vld [vmem:[%s1070_s1 + $0x28] sm:$0xff]  ;;  %vm529_vm3 = vcmask 1040384  }
  0x17   : > { %646 = vmatprep.subr.mxu0 %v805_v1  ;;  %663 = vmatprep.mubr.msk.f32.mxu1 %vm806_vm0, %v805_v1  ;;  %s628_s24 = sshll.u32 %s265_s18, 3  ;;  %v454_v9 = vld [vmem:[%s1073_s4 + $0x18] sm:$0xff]  ;;  %v298_v15 = vld [vmem:[%s1070_s1 + $0x20] sm:$0xff]  ;;  %v300_v26 = vld [vmem:[%s1070_s1 + $0x30] sm:$0xff] }
  0x18   : > { %647 = vmatpush3.msra.mxu0 %v375_v2  ;;  %s929_s14 = scalar_lea.vmem %s1069_s0, %s628_s24  ;;  %656 = vmatpush3.msra.mxu1 %v454_v9  ;;  %v453_v28 = vld [vmem:[%s1073_s4 + $0x10] sm:$0xff]  ;;  %v301_v33 = vld [vmem:[%s1070_s1 + $0x38] sm:$0xff]  ;;  %v302_v38 = vld [vmem:[%s1070_s1 + $0x40] sm:$0xff]  ;;  %s727_s24 = scalar_lea.vmem %s558_s17, 16 }
  0x19   : > { %648 = vmatprep.subr.mxu0 %v805_v1  ;;  %v277_v10 = vld [vmem:[%s929_s14] sm:$0xff]  ;;  %v278_v11 = vld [vmem:[%s929_s14 + $0x8] sm:$0xff]  ;;  %v279_v12 = vld [vmem:[%s929_s14 + $0x10] sm:$0xff]  ;;  %657 = vmatprep.subr.mxu1 %v805_v1  ;;  %p728_p12 = scmp.ne.s32.totalorder %s558_s17, %s727_s24  ;;  %p735_p2 = scmp.lt.s32.totalorder %s733_s30, %s727_s24 }
  0x1a   : > { %649 = vmatpush3.msra.mxu0 %v374_v3  ;;  %v280_v13 = vld [vmem:[%s929_s14 + $0x18] sm:$0xff]  ;;  %v281_v14 = vld [vmem:[%s929_s14 + $0x20] sm:$0xff]  ;;  %v310_v16 = vadd.f32 %v294_v5, %v277_v10  ;;  %v311_v17 = vadd.f32 %v295_v6, %v278_v11  ;;  %v312_v18 = vadd.f32 %v296_v7, %v279_v12  ;;  %v282_v20 = vld [vmem:[%s929_s14 + $0x28] sm:$0xff]  ;;  %658 = vmatpush3.msra.mxu1 %v453_v28 }
  0x1b   : > { %650 = vmatprep.subr.mxu0 %v805_v1  ;;  %v313_v19 = vadd.f32 %v297_v8, %v280_v13  ;;  %v314_v23 = vadd.f32 %v298_v15, %v281_v14  ;;  %v283_v25 = vld [vmem:[%s929_s14 + $0x30] sm:$0xff]  ;;  %v315_v29 = vadd.f32 %v299_v21, %v282_v20  ;;  %v284_v32 = vld [vmem:[%s929_s14 + $0x38] sm:$0xff]  ;;  %659 = vmatprep.subr.mxu1 %v805_v1  ;;  %v285_v37 = vld [vmem:[%s929_s14 + $0x40] sm:$0xff]  ;;  %p729_p13 = pnand %p728_p12, %p881_p4  ;;  %p736_p3 = por %p735_p2, %p734_p1 }
  0x1c   : > { %651 = vmatpush3.msra.mxu0 %v373_v4  ;;  %v328_v22 = vsel %vm327_vm2, %v310_v16, 0.0  ;;  %v329_v24 = vsel %vm327_vm2, %v311_v17, 0.0  ;;  %v331_v30 = vsel %vm327_vm2, %v312_v18, 0.0  ;;  %v316_v35 = vadd.f32 %v300_v26, %v283_v25  ;;  %v286_v42 = vld [vmem:[%s929_s14 + $0x48] sm:$0xff]  ;;  %v287_v47 = vld [vmem:[%s929_s14 + $0x50] sm:$0xff]  ;;  %v288_v52 = vld [vmem:[%s929_s14 + $0x58] sm:$0xff] }
  0x1d   : > { %v330_v27 = vadd.f32 %v329_v24, %v328_v22  ;;  %v333_v31 = vsel %vm327_vm2, %v313_v19, 0.0  ;;  %v335_v36 = vsel %vm327_vm2, %v314_v23, 0.0  ;;  %v317_v40 = vadd.f32 %v301_v33, %v284_v32  ;;  %v303_v43 = vld [vmem:[%s1070_s1 + $0x48] sm:$0xff]  ;;  %v304_v48 = vld [vmem:[%s1070_s1 + $0x50] sm:$0xff]  ;;  %v305_v53 = vld [vmem:[%s1070_s1 + $0x58] sm:$0xff]  ;;  %p730_p0 = pneg %p729_p13 }
  0x1e   : > { %v337_v41 = vsel %vm327_vm2, %v315_v29, 0.0  ;;  %v318_v45 = vadd.f32 %v302_v38, %v285_v37  ;;  %v339_v46 = vsel %vm327_vm2, %v316_v35, 0.0  ;;  %v319_v50 = vadd.f32 %v303_v43, %v286_v42  ;;  %v289_v57 = vld [vmem:[%s929_s14 + $0x60] sm:$0xff]  ;;  %v290_v62 = vld [vmem:[%s929_s14 + $0x68] sm:$0xff]  ;;  %v291_v4 = vld [vmem:[%s929_s14 + $0x70] sm:$0xff] }
  0x1f   : > { %v332_v34 = vadd.f32 %v331_v30, %v330_v27  ;;  %v341_v51 = vsel %vm327_vm2, %v317_v40, 0.0  ;;  %v320_v55 = vadd.f32 %v304_v48, %v287_v47  ;;  %v306_v58 = vld [vmem:[%s1070_s1 + $0x60] sm:$0xff]  ;;  %v321_v60 = vadd.f32 %v305_v53, %v288_v52  ;;  %v307_v63 = vld [vmem:[%s1070_s1 + $0x68] sm:$0xff]  ;;  %v308_v5 = vld [vmem:[%s1070_s1 + $0x70] sm:$0xff]  ;;  %p737_p5 = pnand %p736_p3, %p730_p0 }
  0x20   : > { %v343_v56 = vsel %vm327_vm2, %v318_v45, 0.0  ;;  %v345_v61 = vsel %vm327_vm2, %v319_v50, 0.0  ;;  %v322_v2 = vadd.f32 %v306_v58, %v289_v57  ;;  %v323_v7 = vadd.f32 %v307_v63, %v290_v62  ;;  %v292_v9 = vld [vmem:[%s929_s14 + $0x78] sm:$0xff]  ;;  %v326_v28 = vld [vmem:[#allocation2] sm:$0x1]  ;;  %v452_v33 = vld [vmem:[%s1073_s4 + $0x8] sm:$0xff] }
  0x21   : > { %v334_v39 = vadd.f32 %v333_v31, %v332_v34  ;;  %v347_v3 = vsel %vm327_vm2, %v320_v55, 0.0  ;;  %v349_v8 = vsel %vm327_vm2, %v321_v60, 0.0  ;;  %v309_v10 = vld [vmem:[%s1070_s1 + $0x78] sm:$0xff]  ;;  %v324_v12 = vadd.f32 %v308_v5, %v291_v4  ;;  %660 = vmatpush3.msra.mxu1 %v452_v33  ;;  %v451_v34 = vld [vmem:[%s1073_s4] sm:$0xff]  ;;  %s545_s14 = scalar_lea.sflag [#allocation4], %s260_s15 }
  0x22   : > { %v351_v13 = vsel %vm327_vm2, %v322_v2, 0.0  ;;  %v325_v15 = vadd.f32 %v309_v10, %v292_v9  ;;  %v353_v16 = vsel %vm327_vm2, %v323_v7, 0.0  ;;  %661 = vmatprep.subr.mxu1 %v805_v1  ;;  %v377_v35 = vld [vmem:[%s1072_s3] sm:$0x1] }
  0x23   : > { %v336_v44 = vadd.f32 %v335_v36, %v334_v39  ;;  %v355_v18 = vsel %vm327_vm2, %v324_v12, 0.0  ;;  %662 = vmatpush3.msra.mxu1 %v451_v34  ;;  %v455_v39 = vld [vmem:[%s1074_s5] sm:$0x1] }
  0x24   : > { %v357_v20 = vsel %vm327_vm2, %v325_v15, 0.0 }
  0x25   : > { %v338_v49 = vadd.f32 %v337_v41, %v336_v44 }
  0x27   : > { %v340_v54 = vadd.f32 %v339_v46, %v338_v49 }
  0x29   : > { %v342_v59 = vadd.f32 %v341_v51, %v340_v54 }
  0x2b   : > { %v344_v0 = vadd.f32 %v343_v56, %v342_v59 }
  0x2d   : > { %v346_v6 = vadd.f32 %v345_v61, %v344_v0 }
  0x2f   : > { %v348_v11 = vadd.f32 %v347_v3, %v346_v6 }
  0x31   : > { %v350_v14 = vadd.f32 %v349_v8, %v348_v11 }
  0x33   : > { %v352_v17 = vadd.f32 %v351_v13, %v350_v14 }
  0x35   : > { %v354_v19 = vadd.f32 %v353_v16, %v352_v17 }
  0x37   : > { %v356_v21 = vadd.f32 %v355_v18, %v354_v19 }
  0x39   : > { %v358_v22 = vadd.f32 %v357_v20, %v356_v21 }
  0x3b   : > { %v359_v23 = vrot.slane %v358_v22, 4 }
  0x3d   : > { %v360_v24 = vadd.f32 %v359_v23, %v358_v22 }
  0x3f   : > { %v361_v25 = vrot.slane %v360_v24, 2 }
  0x41   : > { %v362_v26 = vadd.f32 %v361_v25, %v360_v24 }
  0x43   : > { %v363_v27 = vrot.slane %v362_v26, 1 }
  0x45   : > { %v364_v29 = vadd.f32 %v363_v27, %v362_v26 }
  0x47   : > { %v365_v30 = vadd.f32 %v364_v29, %v326_v28 }
  0x49   : > { %367 = vst.msk [vmem:[#allocation2] sm:$0x1] %vm274_vm1, %v365_v30 }
  0x50   : > { %v371_v31 = vld [vmem:[#allocation2] sm:$0x1] }
  0x51   : > { %v372_v32 = vmul.f32 0.0078125, %v371_v31 }
  0x53   : > { %653 = vmatmul.mubr.msk.f32.vlgmr.msra.gmra.mxu0 %vm327_vm2, %v372_v32 }
 0x113   : > { %v447_v36 = vpop.f32.mrf.mxu0 }
 0x114   : > { %v448_v37 = vadd.f32 %v447_v36, %v377_v35 }
 0x115   : > { %v654_v38 = vpop.f32.mrf.mxu0 }
 0x116   : > { %664 = vmatmul.mubr.msk.f32.vlgmr.msra.gmra.mxu1 %vm327_vm2, %v448_v37 }
 0x1d6   : > { %v525_v1 = vpop.f32.mrf.mxu1 }
 0x1d7   : > { %v526_v40 = vadd.f32 %v525_v1, %v455_v39 }
 0x1d8   : > { %v665_v41 = vpop.f32.mrf.mxu1 }
 0x1d9   : > { %v530_v42 = vsel %vm529_vm3, %v526_v40, -inf }
 0x1da   : > { %531 = vmax.xlane.f32.xlu0 %v530_v42 }
 0x263   : > { %v532_v43 = vpop.xlane.xlu0 %531 }
 0x264   : > { %v533_v44 = vsub.f32 %v526_v40, %v532_v43 }
 0x266   : > { %v534_v45 = vmul.f32 1.442695, %v533_v44 }
 0x268   : > { %723 = vpow2.f32 %v534_v45 }
 0x275   : > { %v724_v46 = vpop.eup %723 }
 0x276   : > { %v536_v47 = vsel %vm529_vm3, %v724_v46, 0.0 }
 0x277   : > { %537 = vadd.xlane.f32.xlu0 %v536_v47 }
 0x300   : > { %v538_v48 = vpop.xlane.xlu0 %537 }
 0x301   : > { %725 = vlog2.f32 %v538_v48 }
 0x30e   : > { %v726_v49 = vpop.eup %725 }
 0x30f   : > { %v540_v50 = vmul.f32 0.6931472, %v726_v49 }
 0x311   : > { %v541_v51 = vadd.f32 %v540_v50, %v532_v43 }
 0x313   : > { %v542_v52 = vsub.f32 %v526_v40, %v541_v51 }
 0x315   : > { %543 = vst [vmem:[%s261_s16] sm:$0x1] %v542_v52 }
 0x316   : > { %740 = shalt.err (!%p737_p5)
}
 0x317   : > { %s741_s8 = scalar_lea.hbm %s555_s20, 16  ;;  %s745_s12 = scalar_lea.hbm %s1075_s6, 32 }
 0x318   : > { %p742_p6 = scmp.ne.s32.totalorder %s555_s20, %s741_s8  ;;  %p746_p10 = scmp.lt.s32.totalorder %s555_s20, %s1075_s6 }
 0x319   : > { %p747_p11 = scmp.lt.s32.totalorder %s745_s12, %s741_s8 }
 0x31a   : > { %p743_p7 = pnand %p742_p6, %p881_p4 }
 0x31b   : > { %p748_p12 = por %p747_p11, %p746_p10 }
 0x31c   : > { %p744_p9 = pneg %p743_p7 }
 0x31e   : > { %p749_p13 = pnand %p748_p12, %p744_p9 }
 0x320   : > { %752 = shalt.err (!%p749_p13)
}
 0x321   : > { %666 = dma.vmem_to_hbm [thread:$0]  (%p881_p4), %s558_s17, 16, %s555_s20, %s545_s14  }
 0x322 PF: > { %p672_p0 = scmp.ge.s32.totalorder %s803_s26, 2  ;;  %s569_s18 = sand.u32 1, %s783_s21  }
 0x323   : > { %s570_s19 = scalar_lea.sflag [#allocation4], %s569_s18 }
 0x324   : > { %p669_p1 = pnand %p672_p0, %p888_p8 }
 0x326   : > { %p670_p2 = pneg %p669_p1 }
 0x328   : > { %778 = dma.done.wait (%p670_p2), %s570_s19, 16  }
 0x329   : > { %780 = vsyncadd (%p670_p2), %s570_s19, 4294967280  ;;  %s19_s26 = sadd.s32 1, %s803_s26   ;;  %s1078_s21 = smov %s787_s22 }
 0x32a   : > { %p16_p3 = scmp.ge.s32.totalorder %s19_s26, 4   ;;  %s1079_s22 = smov %s791_s23 }
 0x32b   : > { %s1080_s23 = smov %s894_s10  ;;  %s1081_s24 = smov %s799_s25 }
 0x32c   : > { %s1082_s25 = smov %s1084_s29  ;;  %18 = sbr.rel (!%p16_p3) target bundleno = 4 (0x4), region = 88 }
 0x331   :  { %574 = vsyncpa [#allocation4], 1 }
 0x332   :  { %576 = vsyncpa [#allocation4 + $0x1], 1 }

</bundles_post_ra>
